<compile_context>
chip_gen: v7x
topology: tpu7x:2x2x1
jax: 0.10.0
libtpu: 0.0.40
codegen_flags: <defaults>
</compile_context>

<pallas_src>
import jax
import jax.numpy as jnp
from jax import lax
from jax.experimental import pallas as pl
from jax.experimental.pallas import tpu as pltpu


# ---------------------------------------------------------------------------
# Minimal irreps bookkeeping (stands in for e3nn.o3.Irreps / TRIrreps).
# An irrep is (mul, (l, parity)); a TR-irreps list pairs it with tr in {+1,-1}.
# ---------------------------------------------------------------------------
def ir_dim(ir):
    l, _p = ir
    return 2 * l + 1


def irreps_dim(irreps):
    return sum(mul * ir_dim(ir) for mul, ir in irreps)


def irreps_offsets(irreps):
    offs, o = [], 0
    for mul, ir in irreps:
        offs.append(o)
        o += mul * ir_dim(ir)
    return offs


def get_tr_instr_lin(irreps_in, tr_in, irreps_out, tr_out, allow_zero=True):
    instructions = [
        (i_in, i_out)
        for i_in, ((mul_in, ir_i), t_in) in enumerate(zip(irreps_in, tr_in))
        for i_out, ((mul_out, ir_o), t_out) in enumerate(zip(irreps_out, tr_out))
        if ir_i == ir_o and t_in == t_out
    ]
    out_set = {i_out for _, i_out in instructions}
    if not allow_zero:
        assert len(out_set) == len(irreps_out)
    return instructions


def build_tr_linear_weight(key, irreps_in, tr_in, irreps_out, tr_out):
    """Dense (dim_in, dim_out) matrix equivalent to the instruction-based o3.Linear."""
    instrs = get_tr_instr_lin(irreps_in, tr_in, irreps_out, tr_out, allow_zero=True)
    dim_in, dim_out = irreps_dim(irreps_in), irreps_dim(irreps_out)
    in_offs, out_offs = irreps_offsets(irreps_in), irreps_offsets(irreps_out)

    # e3nn path_normalization="element": alpha = sum of mul_in over instructions
    # sharing the same i_out; path_weight = alpha ** -0.5.
    fan = {}
    for i_in, i_out in instrs:
        fan[i_out] = fan.get(i_out, 0) + irreps_in[i_in][0]

    W = jnp.zeros((dim_in, dim_out), jnp.float32)
    keys = jax.random.split(key, max(len(instrs), 1))
    for k, (i_in, i_out) in zip(keys, instrs):
        mul_in, ir = irreps_in[i_in]
        mul_out, _ = irreps_out[i_out]
        d = ir_dim(ir)
        w = jax.random.normal(k, (mul_in, mul_out), jnp.float32)  # e3nn: randn init
        pw = fan[i_out] ** -0.5
        block = pw * jnp.kron(w, jnp.eye(d, dtype=jnp.float32))   # (mul_in*d, mul_out*d)
        W = W.at[
            in_offs[i_in] : in_offs[i_in] + mul_in * d,
            out_offs[i_out] : out_offs[i_out] + mul_out * d,
        ].set(block)
    return W


def prepare_skip_weight(W, compute_dtype=None):
    """One-time (cacheable) weight prep: optional cast to the MXU compute dtype.

    Storing W in bf16 halves its HBM traffic.  Do this once outside the hot
    path; the kernel casts the `old` tile in VMEM, so activations never pay an
    extra HBM cast/pad pass.
    """
    return W if compute_dtype is None else W.astype(compute_dtype)


# ---------------------------------------------------------------------------
# Pallas kernels
# ---------------------------------------------------------------------------
def _sc_linear_add_kernel(old_ref, w_ref, new_ref, out_ref):
    # out = old @ W + new   (MXU matmul, f32 accumulation, fused skip add).
    # The LHS cast happens on the VMEM tile (no bf16 HBM copy of `old`).
    lhs = old_ref[...].astype(w_ref.dtype)
    prec = (lax.Precision.HIGHEST if w_ref.dtype == jnp.float32
            else lax.Precision.DEFAULT)
    acc = jnp.dot(lhs, w_ref[...], preferred_element_type=jnp.float32,
                  precision=prec)
    out_ref[...] = (acc + new_ref[...].astype(jnp.float32)).astype(out_ref.dtype)


def _add_kernel(old_ref, new_ref, out_ref):
    out_ref[...] = (old_ref[...] + new_ref[...]).astype(out_ref.dtype)


# ---------------------------------------------------------------------------
# Wrapper helpers
# ---------------------------------------------------------------------------
_LANE = 128


def _round_up(x, m):
    return ((x + m - 1) // m) * m


def _vmem_capacity_bytes():
    try:
        return int(pltpu.get_tpu_info().vmem_capacity_bytes)
    except Exception:
        return 64 << 20  # conservative: v7x per-TC VMEM


def _budgets():
    cap = _vmem_capacity_bytes()
    # Per-step (already double-buffered) working-set budget, generation aware:
    # ~42 MiB on 128-MiB parts (v5e/v6e), ~21 MiB on 64-MiB parts (v7x).
    step_budget = min(48 << 20, max(12 << 20, cap // 3))
    # Never hand the whole physical VMEM to the kernel; leave compiler headroom.
    limit_cap = max(24 << 20, cap - (12 << 20))
    return step_budget, limit_cap


def _pick_row_tile(N, tn_cap, sub):
    """Balanced row tile; >=2 row tiles when N allows (two TCs on v7x)."""
    tn_cap = max(sub, tn_cap)
    n_tiles = pl.cdiv(N, tn_cap)
    if N > sub:
        n_tiles = max(n_tiles, 2)
    tn = _round_up(pl.cdiv(N, n_tiles), sub)
    if tn >= 256 and _round_up(tn, _LANE) <= tn_cap:
        tn = _round_up(tn, _LANE)          # MXU/DMA-friendly alignment when free
    return min(tn, _round_up(N, sub))


# ---------------------------------------------------------------------------
# Public entry point
# ---------------------------------------------------------------------------
def tr_skip_connection(old, new, W=None, *, tile_n=None, tile_d=None):
    """Pallas implementation of TRSkipConnection.forward.

    W is the dense equivalent of the o3.Linear (None <=> irreps_in == irreps_out),
    optionally pre-cast via prepare_skip_weight (e.g. bf16 storage).
    old: (N, dim_in), new: (N, dim_out)  ->  (N, dim_out)
    """
    N = old.shape[0]
    out_dtype = new.dtype
    step_budget, limit_cap = _budgets()

    # ---------------- identity branch: out = old + new -----------------------
    if W is None:
        assert old.shape == new.shape
        D = new.shape[1]
        item = jnp.dtype(out_dtype).itemsize
        sub = 16 if out_dtype == jnp.bfloat16 else 8
        per_row = 2 * 3 * _round_up(D, _LANE) * item      # old + new + out, 2-buffered
        tn_cap = min(2048, max(sub, (step_budget // per_row) // sub * sub))
        tn = (_pick_row_tile(N, tn_cap, sub) if tile_n is None
              else min(_round_up(max(tile_n, sub), sub), _round_up(N, sub)))
        grid_rows = pl.cdiv(N, tn)
        vmem_limit = int(min(limit_cap, max(32 << 20, per_row * tn + (8 << 20))))
        return pl.pallas_call(
            _add_kernel,
            out_shape=jax.ShapeDtypeStruct((N, D), out_dtype),
            grid_spec=pltpu.PrefetchScalarGridSpec(
                num_scalar_prefetch=0,
                grid=(grid_rows,),
                in_specs=[pl.BlockSpec((tn, D), lambda i: (i, 0)),
                          pl.BlockSpec((tn, D), lambda i: (i, 0))],
                out_specs=pl.BlockSpec((tn, D), lambda i: (i, 0))),
            compiler_params=pltpu.CompilerParams(
                dimension_semantics=("parallel",),
                vmem_limit_bytes=vmem_limit),
        )(old, new)

    # ---------------- linear + skip branch: out = old @ W + new --------------
    K = old.shape[1]
    D = new.shape[1]
    assert W.shape == (K, D)

    in_item = jnp.dtype(old.dtype).itemsize
    w_item = jnp.dtype(W.dtype).itemsize
    o_item = jnp.dtype(out_dtype).itemsize
    sub = 16 if old.dtype == jnp.bfloat16 else 8
    Kr_lane = _round_up(K, _LANE)   # lane footprint of the old tile in VMEM
    Kr_sub = _round_up(K, 8)        # sublane footprint of the W tile in VMEM

    def step_bytes(tn, bd):
        bd_l = _round_up(bd, _LANE)
        return (2 * tn * Kr_lane * in_item       # old tile (double-buffered)
                + 2 * Kr_sub * bd_l * w_item     # W tile (conservatively x2)
                + 2 * tn * bd_l * o_item         # new tile
                + 2 * tn * bd_l * o_item)        # out tile

    # Column tiling: keep W whole (DMA'd once) when it fits the per-step budget
    # with a decent row tile; otherwise tile columns in 128-lane multiples.
    D_l = _round_up(D, _LANE)
    if tile_d is not None:
        td = max(_LANE, min(_round_up(tile_d, _LANE), D_l))
    else:
        td = D_l
        while td > _LANE and step_bytes(min(128, _round_up(N, sub)), td) > step_budget:
            td -= _LANE
    split_cols = td < D_l
    bd = td if split_cols else D          # actual block width (full dim if unsplit)

    # Row tile under the VMEM budget.
    per_row = 2 * (Kr_lane * in_item + 2 * _round_up(bd, _LANE) * o_item)
    fixed = 2 * Kr_sub * _round_up(bd, _LANE) * w_item
    avail = step_budget - fixed
    if avail < per_row * sub:
        # TODO(synk): for dim_in beyond a few thousand, add a K grid axis
        # ('arbitrary') with an f32 VMEM accumulator instead of shrinking tiles.
        tn_cap = sub
    else:
        tn_cap = min(2048, (avail // per_row) // sub * sub)
    tn = (_pick_row_tile(N, tn_cap, sub) if tile_n is None
          else min(_round_up(max(tile_n, sub), sub), _round_up(N, sub)))
    grid_rows = pl.cdiv(N, tn)

    vmem_limit = int(min(limit_cap, max(32 << 20, step_bytes(tn, bd) + (8 << 20))))

    # TODO(synk): W is block-sparse by construction (kron with I_{2l+1} + many
    # all-zero irrep blocks); for large irreps widths, skip zero column tiles or
    # use per-irrep grouped matmuls instead of one dense contraction.
    if not split_cols:
        grid = (grid_rows,)
        in_specs = [
            pl.BlockSpec((tn, K), lambda i: (i, 0)),     # old row tile
            pl.BlockSpec((K, D), lambda i: (0, 0)),      # whole W, DMA'd once
            pl.BlockSpec((tn, D), lambda i: (i, 0)),     # new row tile
        ]
        out_specs = pl.BlockSpec((tn, D), lambda i: (i, 0))
        dims = ("parallel",)
    else:
        grid_cols = pl.cdiv(D, td)
        # Column axis OUTER so the W column tile is the revisited (not re-DMA'd)
        # block across the inner row sweep.
        grid = (grid_cols, grid_rows)
        in_specs = [
            pl.BlockSpec((tn, K), lambda j, i: (i, 0)),
            pl.BlockSpec((K, td), lambda j, i: (0, j)),
            pl.BlockSpec((tn, td), lambda j, i: (i, j)),
        ]
        out_specs = pl.BlockSpec((tn, td), lambda j, i: (i, j))
        dims = ("parallel", "parallel")

    return pl.pallas_call(
        _sc_linear_add_kernel,
        out_shape=jax.ShapeDtypeStruct((N, D), out_dtype),
        grid_spec=pltpu.PrefetchScalarGridSpec(
            num_scalar_prefetch=0,
            grid=grid,
            in_specs=in_specs,
            out_specs=out_specs),
        compiler_params=pltpu.CompilerParams(
            dimension_semantics=dims,
            vmem_limit_bytes=vmem_limit),
    )(old, W, new)


# ---------------------------------------------------------------------------
if __name__ == "__main__":
    key = jax.random.PRNGKey(0)

    # irreps_in  = 4x0e(E) + 2x1o(O) + 3x0e(O)
    # irreps_out = 8x0e(E) + 4x1o(O) + 5x2e(E)
    # Instructions: (0,0) [0e,E] and (1,1) [1o,O]; the 3x0e(O) input has no
    # TR-matching output, and 5x2e(E) output gets zeros (allow_zero=True).
    irreps_in = [(4, (0, 1)), (2, (1, -1)), (3, (0, 1))]
    tr_in = [1, -1, -1]
    irreps_out = [(8, (0, 1)), (4, (1, -1)), (5, (2, 1))]
    tr_out = [1, -1, 1]

    dim_in = irreps_dim(irreps_in)    # 4 + 6 + 3  = 13
    dim_out = irreps_dim(irreps_out)  # 8 + 12 + 25 = 45
    N = 16                            # number of nodes/edges

    k_w, k_old, k_new, k_w2 = jax.random.split(key, 4)
    W = build_tr_linear_weight(k_w, irreps_in, tr_in, irreps_out, tr_out)
    old = jax.random.normal(k_old, (N, dim_in), jnp.float32)
    new = jax.random.normal(k_new, (N, dim_out), jnp.float32)

    # f32 path -- vs full-precision plain-JAX reference.
    out = jax.block_until_ready(tr_skip_connection(old, new, W))
    ref = jnp.dot(old, W, precision=lax.Precision.HIGHEST) + new
    assert out.shape == (N, dim_out)
    assert jnp.allclose(out, ref, atol=1e-4, rtol=1e-4)

    # bf16 weight path (in-kernel cast of the old tile, f32 MXU accumulation).
    W_bf = prepare_skip_weight(W, jnp.bfloat16)      # one-time, cacheable
    out_bf = jax.block_until_ready(tr_skip_connection(old, new, W_bf))
    ref_bf = (old.astype(jnp.bfloat16).astype(jnp.float32)
              @ W.astype(jnp.bfloat16).astype(jnp.float32)) + new
    assert jnp.allclose(out_bf, ref_bf, atol=2e-2, rtol=2e-2)

    # Identity branch (irreps_in == irreps_out -> sc is None).
    out_id = jax.block_until_ready(tr_skip_connection(new, new, None))
    assert jnp.allclose(out_id, new + new, atol=1e-6)

    # Ragged N (not a multiple of the row tile) exercises the masked edge block.
    old_r = jax.random.normal(k_old, (13, dim_in), jnp.float32)
    new_r = jax.random.normal(k_new, (13, dim_out), jnp.float32)
    out_r = jax.block_until_ready(tr_skip_connection(old_r, new_r, W))
    ref_r = jnp.dot(old_r, W, precision=lax.Precision.HIGHEST) + new_r
    assert jnp.allclose(out_r, ref_r, atol=1e-4, rtol=1e-4)

    # Forced column tiling (2-D grid, ragged last column block).
    D2 = 200
    W2 = jax.random.normal(k_w2, (dim_in, D2), jnp.float32)
    new2 = jax.random.normal(k_new, (N, D2), jnp.float32)
    out2 = jax.block_until_ready(tr_skip_connection(old, new2, W2, tile_d=128))
    ref2 = jnp.dot(old, W2, precision=lax.Precision.HIGHEST) + new2
    assert jnp.allclose(out2, ref2, atol=1e-4, rtol=1e-4)

    print("KERNEL_OK")
</pallas_src>

<mosaic_0001>
module attributes {stable_mosaic.version = 11 : i64} {
  func.func @_sc_linear_add_kernel(%arg0: i32, %arg1: memref<8x13xf32, #tpu.memory_space<vmem>>, %arg2: memref<13x45xf32, #tpu.memory_space<vmem>>, %arg3: memref<8x45xf32, #tpu.memory_space<vmem>>, %arg4: memref<8x45xf32, #tpu.memory_space<vmem>>) attributes {dimension_semantics = [#tpu.dimension_semantics<parallel>], iteration_bounds = array<i64: 2>, scalar_prefetch = 0 : i64, scratch_operands = 0 : i64, tpu.core_type = #tpu.core_type<tc>, window_params = [{transform_indices = @transform_0, window_bounds = array<i64: 8, 13>}, {pipeline_mode = #tpu.pipeline_mode<synchronous>, transform_indices = @transform_1, window_bounds = array<i64: 13, 45>}, {transform_indices = @transform_2, window_bounds = array<i64: 8, 45>}, {transform_indices = @transform_3, window_bounds = array<i64: 8, 45>}]} {
    %c0 = arith.constant 0 : index
    %c0_0 = arith.constant 0 : index
    %0 = vector.load %arg1[%c0, %c0_0] : memref<8x13xf32, #tpu.memory_space<vmem>>, vector<8x13xf32>
    %c0_1 = arith.constant 0 : index
    %c0_2 = arith.constant 0 : index
    %1 = vector.load %arg2[%c0_1, %c0_2] : memref<13x45xf32, #tpu.memory_space<vmem>>, vector<13x45xf32>
    %cst = arith.constant dense<0.000000e+00> : vector<8x45xf32>
    %2 = tpu.matmul %0, %1, %cst {dimension_numbers = #tpu.dot_dimension_numbers<[1], [0], [0], [1], [0, 0, 1, 1], [], []>, precision = #tpu.contract_precision<fp32>} : vector<8x13xf32>, vector<13x45xf32>, vector<8x45xf32> -> vector<8x45xf32>
    %c0_3 = arith.constant 0 : index
    %c0_4 = arith.constant 0 : index
    %3 = vector.load %arg3[%c0_3, %c0_4] : memref<8x45xf32, #tpu.memory_space<vmem>>, vector<8x45xf32>
    %4 = arith.addf %2, %3 : vector<8x45xf32>
    %c0_5 = arith.constant 0 : index
    %c0_6 = arith.constant 0 : index
    %5 = vector.load %arg4[%c0_5, %c0_6] : memref<8x45xf32, #tpu.memory_space<vmem>>, vector<8x45xf32>
    tpu.vector_store %arg4[%c0_5, %c0_6], %4 {strides = array<i32>} : memref<8x45xf32, #tpu.memory_space<vmem>>, vector<8x45xf32>,
    return
  }
  func.func @transform_0(%arg0: i32) -> (i32, i32) {
    %c0_i32 = arith.constant 0 : i32
    %c0_i32_0 = arith.constant 0 : i32
    return %arg0, %c0_i32 : i32, i32
  }
  func.func @transform_1(%arg0: i32) -> (i32, i32) {
    %c0_i32 = arith.constant 0 : i32
    %c0_i32_0 = arith.constant 0 : i32
    %c0_i32_1 = arith.constant 0 : i32
    return %c0_i32, %c0_i32_0 : i32, i32
  }
  func.func @transform_2(%arg0: i32) -> (i32, i32) {
    %c0_i32 = arith.constant 0 : i32
    %c0_i32_0 = arith.constant 0 : i32
    return %arg0, %c0_i32 : i32, i32
  }
  func.func @transform_3(%arg0: i32) -> (i32, i32) {
    %c0_i32 = arith.constant 0 : i32
    %c0_i32_0 = arith.constant 0 : i32
    return %arg0, %c0_i32 : i32, i32
  }
}

</mosaic_0001>

<bundles_post_ra>
// kernel: tpu_custom_call.1
= control target key start
LH: loop header
LB: loop body
LE: loop exit
PB: predicated region body
PF: predicated region fallthrough
CT: control target
= control target key end

     0   :  { %8 = vsyncpa [#allocation3], 0  ;;  %s1441_s0 = inlined_call_operand.hbm [shape: f32[16,13], index: 0, kind: input, shape index: {}]   ;;  %s1442_s1 = inlined_call_operand.hbm [shape: f32[13,45], index: 1, kind: input, shape index: {}]   ;;  %s1443_s2 = inlined_call_operand.hbm [shape: f32[16,45], index: 2, kind: input, shape index: {}]   ;;  %s1444_s3 = inlined_call_operand.hbm [shape: f32[16,45], index: 3, kind: output, shape index: {}]  }
   0x1   :  { %10 = vsyncpa [#allocation3 + $0x1], 0 }
   0x2   :  { %11 = vsyncpa [#allocation6], 0 }
   0x3   :  { %12 = vsyncpa [#allocation4], 0 }
   0x4   :  { %14 = vsyncpa [#allocation4 + $0x1], 0  ;;  %s1187_s12 = smov 0   ;;  %s1189_s13 = smov 0  }
   0x5   :  { %s1191_s14 = smov 0   ;;  %s1193_s15 = smov 0  }
   0x6 LB: > { %s1208_s16 = sadd.s32 1, %s1156_s15   ;;  %s27_s17 = sadd.s32 1, %s1152_s14  ;;  %s1156_s15 = sphi %s1193_s15, %s1467_s15   ;;  %s1152_s14 = sphi %s1191_s14, %s1466_s14   ;;  %s1148_s13 = sphi %s1189_s13, %s1465_s13   ;;  %s1144_s12 = sphi %s1187_s12, %s1464_s12  }
   0x7   : > { %s24_s18 = ssub.s32 %s1156_s15, %s1208_s16  ;;  %p34_p0 = scmp.ne.s32.totalorder %s1152_s14, %s1148_s13 }
   0x8   : > { %p25_p1 = scmp.eq.s32.totalorder %s24_s18, 0  ;;  %p35_p2 = scmp.eq.s32.totalorder %s1156_s15, 0 }
   0x9   : > { %p953_p4 = scmp.lt.s32.totalorder %s1156_s15, 2  ;;  %s150_s20 = sand.u32 1, %s1156_s15  }
   0xa   : > { %s1219_s19 = scalar_select %p25_p1, %s1152_s14, %s27_s17  }
   0xb   : > { %p36_p5 = por %p35_p2, %p34_p0  ;;  %s152_s21 = sand.u32 1, %s1152_s14  }
   0xc   : > { %s1226_s22 = sshll.u32 %s152_s21, 3  ;;  %s827_s23 = sshll.u32 %s1156_s15, 7 }
   0xd   : > { %s1234_s26 = scalar_lea.hbm %s1441_s0, %s827_s23  ;;  %s154_s27 = scalar_lea.vmem [#allocation2], %s1226_s22 }
   0xe   : > { %s161_s28 = sshll.u32 %s154_s27, 4  ;;  %p1237_p6 = pnand %p953_p4, %p36_p5  ;;  %s1241_s28 = int_to_ptr.vmem [resolvable:$true] %s161_s28 }
   0xf   : > { %s1243_s30 = scalar_lea.sflag [#allocation3], %s150_s20  ;;  %s994_s4 = scalar_lea.hbm %s1234_s26, 128 }
  0x10   : > { %p995_p7 = scmp.ne.s32.totalorder %s1234_s26, %s994_s4  ;;  %p996_p8 = pneg %p1237_p6 }
  0x11   : > { %s999_s7 = scalar_lea.hbm %s1441_s0, 256  ;;  %p1000_p11 = scmp.lt.u32.totalorder %s1234_s26, %s1441_s0 }
  0x12   : > { %p997_p9 = pnand %p996_p8, %p995_p7  ;;  %p1001_p12 = scmp.lt.u32.totalorder %s999_s7, %s994_s4 }
  0x13   : > { %p1003_p1 = scmp.lt.u32.totalorder %s994_s4, %s1234_s26 }
  0x14   : > { %p998_p10 = pneg %p997_p9  ;;  %p1002_p13 = por %p1001_p12, %p1000_p11 }
  0x16   : > { %p1004_p2 = por %p1003_p1, %p1002_p13 }
  0x18   : > { %p1005_p4 = pnand %p1004_p2, %p998_p10 }
  0x1a   : > { %1008 = shalt.err (!%p1005_p4)
}
  0x1b   : > { %s1009_s10 = scalar_lea.vmem %s1241_s28, 128  ;;  %s1158_s11 = smov [#allocation2]  }
  0x1c   : > { %p1010_p5 = scmp.ne.s32.totalorder %s1241_s28, %s1009_s10  ;;  %s1014_s17 = sshll.u32 %s1158_s11, 4  ;;  %s1015_s17 = int_to_ptr.vmem [resolvable:$false] %s1014_s17 }
  0x1d   : > { %s1016_s18 = scalar_lea.vmem %s1015_s17, 256  ;;  %p1017_p3 = scmp.lt.s32.totalorder %s1241_s28, %s1015_s17 }
  0x1e   : > { %p1012_p7 = pnand %p1010_p5, %p996_p8  ;;  %p1018_p11 = scmp.lt.s32.totalorder %s1016_s18, %s1009_s10 }
  0x20   : > { %p1013_p9 = pneg %p1012_p7  ;;  %p1019_p12 = por %p1018_p11, %p1017_p3 }
  0x22   : > { %p1020_p13 = pnand %p1019_p12, %p1013_p9 }
  0x24   : > { %1023 = shalt.err (!%p1020_p13)
}
  0x25   : > { %944 = dma.hbm_to_vmem [thread:$0]  (!%p1237_p6), %s1234_s26, 128, %s1241_s28, %s1243_s30  }
  0x26   : > { %s1272_s20 = sadd.s32 4294967295, %s1156_s15   ;;  %s822_s21 = sadd.s32 4294967294, %s1156_s15  }
  0x27   : > { %p40_p3 = scmp.ne.s32.totalorder %s1148_s13, %s1144_s12  ;;  %p1445_p10 = scmp.eq.s32.totalorder %s1272_s20, 0 }
  0x28   : > { %p111_p1 = scmp.eq.s32.totalorder %s1272_s20, 1  ;;  %p117_p2 = scmp.eq.s32.totalorder %s822_s21, 1 }
  0x29   : > { %p1281_p4 = por %p1445_p10, %p40_p3  ;;  %p823_p5 = scmp.ge.s32.totalorder %s1156_s15, 1 }
  0x2a   : > { %p1289_p7 = por %p111_p1, %p34_p0  ;;  %p1293_p9 = por %p117_p2, %p40_p3 }
  0x2b   : > { %s1451_s24 = scalar_select %p1281_p4, 1, 0 }
  0x2c   : > { %s1452_s25 = scalar_select %p1289_p7, 1, 0 }
  0x2d   : > { %s1453_s26 = scalar_select %p1293_p9, 1, 0 }
  0x2e   : > { %p124_p11 = scmp.lt.s32.totalorder %s1156_s15, 3  ;;  %s1159_s28 = smov [#allocation5]  }
  0x2f   : > { %s136_s4 = sshll.u32 %s1159_s28, 4  ;;  %s1307_s7 = scalar_lea.hbm %s1443_s2, %s827_s23  ;;  %s1312_s4 = int_to_ptr.vmem [resolvable:$true] %s136_s4 }
  0x30   : > { %p1298_p12 = pnand %p823_p5, %p124_p11  ;;  %s172_s8 = scalar_lea.vmem [#allocation7], %s1226_s22 }
  0x31   : > { %s179_s9 = sshll.u32 %s172_s8, 4  ;;  %s1024_s11 = scalar_lea.hbm %s1307_s7, 128  ;;  %s180_s9 = int_to_ptr.vmem [resolvable:$true] %s179_s9 }
  0x32   : > { %s1454_s27 = scalar_select %p1298_p12, 1, 0 }
  0x33   : > { %p937_p0 = pneg %p1298_p12  ;;  %p1025_p3 = scmp.ne.s32.totalorder %s1307_s7, %s1024_s11 }
  0x34   : > { %s1029_s18 = scalar_lea.hbm %s1443_s2, 256  ;;  %p1030_p5 = scmp.lt.u32.totalorder %s1307_s7, %s1443_s2 }
  0x35   : > { %p1316_p13 = pnand %p937_p0, %p1445_p10  ;;  %p1027_p1 = pnand %p1025_p3, %p996_p8 }
  0x36   : > { %p1031_p11 = scmp.lt.u32.totalorder %s1029_s18, %s1024_s11  ;;  %p1033_p0 = scmp.lt.u32.totalorder %s1024_s11, %s1307_s7 }
  0x37   : > { %s1455_s10 = scalar_select %p1316_p13, 1, 0 }
  0x38   : > { %p1028_p2 = pneg %p1027_p1  ;;  %p1032_p9 = por %p1031_p11, %p1030_p5 }
  0x3a   : > { %p1034_p10 = por %p1033_p0, %p1032_p9 }
  0x3c   : > { %p1035_p7 = pnand %p1034_p10, %p1028_p2 }
  0x3e   : > { %1038 = shalt.err (!%p1035_p7)
}
  0x3f   : > { %s1039_s28 = scalar_lea.vmem %s180_s9, 128  ;;  %s1160_s5 = smov [#allocation7]  }
  0x40   : > { %p1040_p4 = scmp.ne.s32.totalorder %s180_s9, %s1039_s28  ;;  %s1044_s6 = sshll.u32 %s1160_s5, 4  ;;  %s1045_s6 = int_to_ptr.vmem [resolvable:$false] %s1044_s6 }
  0x41   : > { %s1046_s8 = scalar_lea.vmem %s1045_s6, 256  ;;  %p1047_p12 = scmp.lt.s32.totalorder %s180_s9, %s1045_s6 }
  0x42   : > { %p1042_p3 = pnand %p1040_p4, %p996_p8  ;;  %p1048_p13 = scmp.lt.s32.totalorder %s1046_s8, %s1039_s28 }
  0x44   : > { %p1043_p1 = pneg %p1042_p3  ;;  %p1049_p5 = por %p1048_p13, %p1047_p12 }
  0x46   : > { %p1050_p11 = pnand %p1049_p5, %p1043_p1 }
  0x48   : > { %1053 = shalt.err (!%p1050_p11)
}
  0x49   : > { %947 = dma.hbm_to_vmem [thread:$0]  (!%p1237_p6), %s1307_s7, 128, %s180_s9, %s1243_s30  }
  0x4a   : > { %s1054_s17 = scalar_lea.hbm %s1442_s1, 256  ;;  %p1456_p10 = scmp.ne.s32.totalorder %s1455_s10, 0 }
  0x4b   : > { %p1055_p8 = scmp.ne.s32.totalorder %s1442_s1, %s1054_s17  ;;  %p1061_p12 = scmp.lt.u32.totalorder %s1054_s17, %s1442_s1 }
  0x4c   : > { %p1056_p4 = pneg %p1456_p10 }
  0x4e   : > { %p1057_p7 = pnand %p1056_p4, %p1055_p8 }
  0x50   : > { %p1058_p9 = pneg %p1057_p7 }
  0x52   : > { %p1063_p13 = pnand %p1061_p12, %p1058_p9 }
  0x54   : > { %1066 = shalt.err (!%p1063_p13)
}
  0x55   : > { %s1067_s29 = scalar_lea.vmem %s1312_s4, 256  ;;  %p1075_p3 = scmp.lt.s32.totalorder %s1312_s4, %s1312_s4 }
  0x56   : > { %p1068_p6 = scmp.ne.s32.totalorder %s1312_s4, %s1067_s29  ;;  %p1076_p1 = scmp.lt.s32.totalorder %s1067_s29, %s1067_s29 }
  0x58   : > { %p1070_p2 = pnand %p1068_p6, %p1056_p4  ;;  %p1077_p5 = por %p1076_p1, %p1075_p3 }
  0x5a   : > { %p1071_p0 = pneg %p1070_p2 }
  0x5c   : > { %p1078_p11 = pnand %p1077_p5, %p1071_p0 }
  0x5e   : > { %1081 = shalt.err (!%p1078_p11)
}
  0x5f   : > { %s1161_s30 = smov 128   ;;  %s1162_s7 = smov 8  }
  0x60   : > { %940 = dma.hbm_to_vmem [thread:$0]  (!%p1456_p10), %s1442_s1, 256, %s1312_s4, [#allocation6], %s1161_s30, %s1161_s30, %s1162_s7  }
  0x61   : > { %p1457_p8 = scmp.ne.s32.totalorder %s1454_s27, 0 }
  0x62   : > { %s190_s6 = sand.u32 (!%p1457_p8), 1, %s1272_s20   ;;  %s192_s8 = sand.u32 (!%p1457_p8), 1, %s1148_s13  }
  0x63   : > { %188 = sbr.rel (%p1457_p8) target bundleno = 372 (0x174), region = 32  ;;  %s1367_s11 = sshll.u32 (!%p1457_p8), %s192_s8, 3 }
  0x64   : > { %s191_s23 = scalar_lea.sflag (!%p1457_p8), [#allocation3], %s190_s6  ;;  %s194_s17 = scalar_lea.vmem (!%p1457_p8), [#allocation2], %s1367_s11 }
  0x65   : > { %p1458_p4 = scmp.ne.s32.totalorder (!%p1457_p8), %s1451_s24, 0 }
  0x6a   : > { %1127 = dma.done.wait (%p1458_p4), %s191_s23, 128  }
  0x6b   : > { %1129 = vsyncadd (%p1458_p4), %s191_s23, 4294967168  ;;  %p1459_p10 = scmp.eq.s32.totalorder %s1272_s20, 0 }
  0x6d   : > { %1131 = dma.done.wait (%p1459_p10), [#allocation6], 256   ;;  %p1460_p7 = pmov %p1459_p10 }
  0x6e   : > { %s207_s27 = scalar_lea.vmem [#allocation7], %s1367_s11 }
  0x6f   : > { %1133 = vsyncadd (%p1460_p7), [#allocation6], 4294967040 }
  0x70   : > { %1135 = dma.done.wait (%p1458_p4), %s191_s23, 128  }
  0x71   : > { %1137 = vsyncadd (%p1458_p4), %s191_s23, 4294967168  ;;  %v1163_v0 = vmov 0.0|0.0   ;;  %vm1164_vm0 = vmmov 0   ;;  %v1165_v1 = vmov 0.0   ;;  %vm243_vm1 = vcmask 1044480   ;;  %v236_v2 = vld [vmem:[#allocation5] sm:$0xff] }
  0x72   : > { %908 = vmatprep.subr.bf16.mxu0 %v1163_v0  ;;  %899 = vmatprep.subr.bf16.mxu1 %v1163_v0  ;;  %vm239_vm2 = vcmask 105472   ;;  %v237_v3 = vld [vmem:[#allocation5 + $0x8] sm:$0x1f]  ;;  %v235_v4 = vld [vmem:[%s194_s17] sm:$0xff]  ;;  %v248_v6 = vand.u32 4294901760, %v236_v2  ;;  %s836_s24 = sshll.u32 %s1272_s20, 7 }
  0x73   : > { %882 = vmatprep.mubr.msk.f32.mxu0 %vm1164_vm0, %v1165_v1  ;;  %861 = vmatprep.mubr.msk.f32.mxu1 %vm1164_vm0, %v1165_v1  ;;  %v245_v5 = vsel %vm243_vm1, %v237_v3, 0  ;;  %v241_v7 = vsel %vm239_vm2, %v235_v4, 0  ;;  %v238_v28 = vld [vmem:[%s207_s27] sm:$0xff]  ;;  %s234_s4 = scalar_lea.vmem [#allocation8], %s1367_s11  ;;  %vm706_vm3 = vcmask 367616   ;;  %s1396_s21 = scalar_lea.hbm %s1444_s3, %s836_s24 }
  0x74   : > { %v251_v8 = vand.u32 4294901760, %v245_v5  ;;  %v314_v9 = vand.u32 4294901760, %v241_v7  ;;  %v326_v10 = vsub.f32 %v236_v2, %v248_v6  ;;  %s722_s10 = sshll.u32 %s234_s4, 4  ;;  %s709_s28 = scalar_lea.sflag [#allocation4], %s192_s8  ;;  %s1398_s10 = int_to_ptr.vmem [resolvable:$true] %s722_s10 }
  0x75   : > { %s1082_s20 = scalar_lea.vmem %s1398_s10, 128  ;;  %p1461_p12 = scmp.ne.s32.totalorder %s1452_s25, 0 }
  0x76   : > { %v900_v11 = vpack.c.bf16 %v251_v8, %v248_v6  ;;  %v333_v12 = vsub.f32 %v245_v5, %v251_v8  ;;  %v315_v13 = vsub.f32 %v241_v7, %v314_v9  ;;  %v327_v14 = vand.u32 4294901760, %v326_v10  ;;  %p1083_p9 = scmp.ne.s32.totalorder %s1398_s10, %s1082_s20  ;;  %s1166_s29 = smov [#allocation8]  }
  0x77   : > { %s1086_s30 = sshll.u32 %s1166_s29, 4  ;;  %s1087_s30 = int_to_ptr.vmem [resolvable:$false] %s1086_s30 }
  0x78   : > { %910 = vmatpush3.bf16.msra.mxu0 %v900_v11  ;;  %901 = vmatpush3.bf16.msra.mxu1 %v900_v11  ;;  %v316_v15 = vand.u32 4294901760, %v315_v13  ;;  %v334_v16 = vand.u32 4294901760, %v333_v12  ;;  %v328_v17 = vsub.f32 %v326_v10, %v327_v14  ;;  %v906_v25 = vpack.c.bf16 %v333_v12, %v326_v10  ;;  %p1084_p13 = pnand %p1083_p9, %p1461_p12  ;;  %s1088_s7 = scalar_lea.vmem %s1087_s30, 256 }
  0x79   : > { %902 = vmatprep.subr.bf16.mxu1 %v1163_v0  ;;  %911 = vmatprep.subr.bf16.mxu0 %v1163_v0  ;;  %p1089_p2 = scmp.lt.s32.totalorder %s1398_s10, %s1087_s30  ;;  %p1090_p0 = scmp.lt.s32.totalorder %s1088_s7, %s1082_s20 }
  0x7a   : > { %v317_v18 = vsub.f32 %v315_v13, %v316_v15  ;;  %v335_v19 = vsub.f32 %v333_v12, %v334_v16  ;;  %v912_v20 = vpack.c.bf16 %v334_v16, %v327_v14  ;;  %v329_v21 = vand.u32 4294901760, %v328_v17  ;;  %p1085_p6 = pneg %p1084_p13 }
  0x7b   : > { %883 = vmatmul.mubr.f32.vlgmr.msra.gmra.mrb[0].mxu0 %v316_v15  ;;  %p1091_p3 = por %p1090_p0, %p1089_p2 }
  0x7c   : > { %v318_v22 = vand.u32 4294901760, %v317_v18  ;;  %v336_v23 = vand.u32 4294901760, %v335_v19  ;;  %913 = vmatpush3.bf16.msra.mxu0 %v912_v20  ;;  %889 = vmatprep.mubr.msk.f32.mxu0 %vm1164_vm0, %v1165_v1 }
  0x7d   : > { %914 = vmatprep.subr.bf16.mxu0 %v1163_v0  ;;  %p1092_p1 = pnand %p1091_p3, %p1085_p6 }
  0x7e   : > { %862 = vmatmul.mubr.f32.vlgmr.msra.gmra.mrb[0].mxu1 %v318_v22  ;;  %v903_v24 = vpack.c.bf16 %v336_v23, %v329_v21 }
  0x7f   : > { %868 = vmatprep.mubr.msk.f32.mxu1 %vm1164_vm0, %v1165_v1 }
  0x80   : > { %904 = vmatpush3.bf16.msra.mxu1 %v903_v24 }
  0x81   : > { %905 = vmatprep.subr.bf16.mxu1 %v1163_v0 }
  0x83   : > { %890 = vmatmul.mubr.f32.vlgmr.msra.gmra.mrb[0].mxu0 %v314_v9 }
  0x84   : > { %916 = vmatpush3.bf16.msra.mxu0 %v900_v11  ;;  %896 = vmatprep.mubr.msk.f32.mxu0 %vm1164_vm0, %v1165_v1 }
  0x86   : > { %869 = vmatmul.mubr.f32.vlgmr.msra.gmra.mrb[0].mxu1 %v314_v9 }
  0x87   : > { %907 = vmatpush3.bf16.msra.mxu1 %v906_v25  ;;  %875 = vmatprep.mubr.msk.f32.mxu1 %vm1164_vm0, %v1165_v1 }
  0x8b   : > { %897 = vmatmul.mubr.f32.vlgmr.msra.gmra.mrb[0].mxu0 %v314_v9 }
  0x8e   : > { %876 = vmatmul.mubr.f32.vlgmr.msra.gmra.mrb[0].mxu1 %v315_v13 }
 0x15e   : > { %v702_v26 = vpop.f32.mrb[0].mxu0 }
 0x15f   : > { %v898_v27 = vpop.f32.mrb[1].mxu0 }
 0x161   : > { %v477_v29 = vpop.f32.mrb[0].mxu1 }
 0x162   : > { %v917_v30 = vadd.f32 %v477_v29, %v238_v28  ;;  %v877_v31 = vpop.f32.mrb[1].mxu1 }
 0x164   : > { %v918_v32 = vadd.f32 %v917_v30, %v702_v26 }
 0x166   : > { %707 = vst.msk [vmem:[%s234_s4] sm:$0xff] %vm706_vm3, %v918_v32 }
 0x167   : > { %1095 = shalt.err (!%p1092_p1)
}
 0x168   : > { %s1096_s9 = scalar_lea.hbm %s1396_s21, 128  ;;  %s1100_s8 = scalar_lea.hbm %s1444_s3, 256 }
 0x169   : > { %p1097_p5 = scmp.ne.s32.totalorder %s1396_s21, %s1096_s9  ;;  %p1101_p4 = scmp.lt.u32.totalorder %s1396_s21, %s1444_s3 }
 0x16a   : > { %p1102_p10 = scmp.lt.u32.totalorder %s1100_s8, %s1096_s9  ;;  %p1104_p9 = scmp.lt.u32.totalorder %s1096_s9, %s1396_s21 }
 0x16b   : > { %p1098_p11 = pnand %p1097_p5, %p1461_p12 }
 0x16c   : > { %p1103_p7 = por %p1102_p10, %p1101_p4 }
 0x16d   : > { %p1099_p8 = pneg %p1098_p11 }
 0x16e   : > { %p1105_p13 = por %p1104_p9, %p1103_p7 }
 0x170   : > { %p1106_p6 = pnand %p1105_p13, %p1099_p8 }
 0x172   : > { %1109 = shalt.err (!%p1106_p6)
}
 0x173   : > { %935 = dma.vmem_to_hbm [thread:$0]  (%p1461_p12), %s1398_s10, 128, %s1396_s21, %s709_s28  }
 0x174 PF: > { %s734_s17 = sand.u32 1, %s1144_s12   ;;  %p1462_p2 = scmp.ne.s32.totalorder %s1453_s26, 0 }
 0x175   : > { %p1463_p0 = scmp.ge.s32.totalorder %s1156_s15, 2  ;;  %s735_s27 = scalar_lea.sflag [#allocation4], %s734_s17 }
 0x177   : > { %p949_p3 = pnand %p1463_p0, %p1462_p2 }
 0x179   : > { %1139 = dma.done.wait (!%p949_p3), %s735_s27, 128  }
 0x17a   : > { %1141 = vsyncadd (!%p949_p3), %s735_s27, 4294967168  ;;  %p17_p1 = scmp.ge.s32.totalorder %s1208_s16, 4   ;;  %s1464_s12 = smov %s1148_s13 }
 0x17b   : > { %s1465_s13 = smov %s1152_s14  ;;  %s1466_s14 = smov %s1219_s19 }
 0x17c   : > { %s1467_s15 = smov %s1208_s16  ;;  %19 = sbr.rel (!%p17_p1) target bundleno = 6 (0x6), region = 92 }
 0x183   :  { %740 = vsyncpa [#allocation3], 1 }
 0x184   :  { %742 = vsyncpa [#allocation3 + $0x1], 1 }
 0x185   :  { %743 = vsyncpa [#allocation6], 1 }
 0x186   :  { %744 = vsyncpa [#allocation4], 1 }
 0x187   :  { %746 = vsyncpa [#allocation4 + $0x1], 1 }

</bundles_post_ra>
